<compile_context>
chip_gen: v7x
topology: tpu7x:2x2x1
jax: 0.10.0
libtpu: 0.0.40
codegen_flags: <defaults>
</compile_context>

<pallas_src>
import functools

import jax
import jax.numpy as jnp
from jax.experimental import pallas as pl
from jax.experimental.pallas import tpu as pltpu


def _ru(v, m):
    return ((v + m - 1) // m) * m


def _build_layout(in_size, hidden, out_size, num_layers):
    """Row layout of the packed (rows, L) parameter buffer.

    Every block starts at a sublane-aligned (multiple-of-8) row offset and has
    a multiple-of-8 row extent, so all in-kernel slices are clean vector loads.
    Hidden/final weights are stored as full (L, L) zero-padded blocks so the
    activations stay 128-lane wide through the whole network (K=L is still a
    single MXU pass, and the padded rows/cols are exactly zero).
    """
    L = max(_ru(hidden, 128), _ru(out_size, 128))
    din_pad = _ru(in_size, 8)
    layout = {}
    off = 0

    def add(name, alloc_rows):
        nonlocal off
        layout[name] = (off, alloc_rows)
        off += alloc_rows

    add("w0", din_pad)                  # fused concat(x, a) weight block
    add("b0", 8)
    for i in range(num_layers):
        add(f"w{i + 1}", L)
        add(f"b{i + 1}", 8)
    add("wf", L)
    add("bf", 8)
    return layout, off, L, din_pad


def pack_brave_params(params, in_size, hidden, out_size, num_layers,
                      dtype=jnp.bfloat16):
    """Pack list of (W, b) [W: (in, out), b: (1, out)] into one padded buffer."""
    layout, rows, L, din_pad = _build_layout(in_size, hidden, out_size,
                                             num_layers)
    buf = jnp.zeros((rows, L), dtype)

    def put(b, name, mat):
        off, _ = layout[name]
        r, c = mat.shape
        return b.at[off:off + r, :c].set(mat.astype(dtype))

    w0, b0 = params[0]
    buf = put(buf, "w0", w0)            # (in_size, hidden) -> rows 0..in_size
    buf = put(buf, "b0", b0)
    for i in range(num_layers):
        w, b = params[1 + i]
        buf = put(buf, f"w{i + 1}", w)  # (hidden, hidden) into (L, L)
        buf = put(buf, f"b{i + 1}", b)
    wf, bf = params[-1]
    buf = put(buf, "wf", wf)            # (hidden, out_size) into (L, L)
    buf = put(buf, "bf", bf)
    return buf, layout, rows, L, din_pad


def _brave_kernel(xa_ref, p_ref, o_ref, *, layout, num_layers, out_size):
    """Fused MLP over one batch tile; params come from one packed VMEM block."""

    def wblock(name):
        off, r = layout[name]           # static Python ints -> static slice
        return p_ref[off:off + r, :]

    def bias(name):
        off, _ = layout[name]
        return p_ref[off:off + 1, :].astype(jnp.float32)

    # Layer 0: single bf16 x bf16 MXU pass over the pre-packed [x|a] tile.
    h = jnp.dot(xa_ref[...], wblock("w0"),
                preferred_element_type=jnp.float32)
    h = jnp.maximum(h + bias("b0"), 0.0)

    # Hidden layers: (TB,128) @ (128,128) clean bf16 MXU tiles, f32 accumulate.
    # Zero-padded lanes stay exactly zero through matmul + bias + ReLU.
    for i in range(num_layers):
        h = jnp.dot(h.astype(jnp.bfloat16), wblock(f"w{i + 1}"),
                    preferred_element_type=jnp.float32)
        h = jnp.maximum(h + bias(f"b{i + 1}"), 0.0)

    # Final layer (no ReLU); store only the true output columns so no separate
    # slice op / extra HBM writes are needed outside the kernel.
    h = jnp.dot(h.astype(jnp.bfloat16), wblock("wf"),
                preferred_element_type=jnp.float32)
    h = h + bias("bf")
    o_ref[...] = h[:, :out_size].astype(o_ref.dtype)


def make_brave_forward(in_size, hidden, out_size, num_layers, batch,
                       layout, rows, L, din_pad):
    # Grid policy (per-generation feedback): one grid step on single-TC chips
    # and at small batch; split into two blocks (one per v7x TensorCore) only
    # when there is enough work to amortize per-core launch/sync cost.
    if batch >= 512 and batch % 2 == 0 and (batch // 2) % 8 == 0:
        nblocks = 2
    else:
        nblocks = 1
    tb = batch // nblocks
    grid = (nblocks,)

    kernel = functools.partial(_brave_kernel, layout=layout,
                               num_layers=num_layers, out_size=out_size)

    flops = 2 * batch * (din_pad * L + (num_layers + 1) * L * L)
    bytes_accessed = 2 * (batch * din_pad + rows * L) + 4 * batch * out_size
    cost = pl.CostEstimate(flops=flops, transcendentals=0,
                           bytes_accessed=bytes_accessed)

    call = pl.pallas_call(
        kernel,
        out_shape=jax.ShapeDtypeStruct((batch, out_size), jnp.float32),
        grid=grid,
        in_specs=[
            pl.BlockSpec((tb, din_pad), lambda i: (i, 0)),   # packed [x|a] tile
            pl.BlockSpec((rows, L), lambda i: (0, 0)),       # packed params
        ],
        out_specs=pl.BlockSpec((tb, out_size), lambda i: (i, 0)),
        compiler_params=pltpu.CompilerParams(
            dimension_semantics=("parallel",)),               # megacore on v7x
        cost_estimate=cost,
    )

    @jax.jit
    def forward(x, a, packed):
        # Fuse the module's torch.cat((x, a), dim=1): pack + bf16-cast here
        # (a few KiB, fuses into one tiny XLA op feeding the kernel); the
        # layer-0 weight block is laid out to match this packed order.
        xa = jnp.concatenate([x, a], axis=1)
        pad = din_pad - xa.shape[1]
        if pad:
            xa = jnp.pad(xa, ((0, 0), (0, pad)))
        return call(xa.astype(jnp.bfloat16), packed)

    return forward


def init_brave_params(key, in_size, num_layers, hidden_size, out_size):
    """Deterministic init mirroring the torch module's layer shapes.

    layers: Linear(in_size, hidden) -> ReLU
            num_layers x [Linear(hidden, hidden) -> ReLU]
            Linear(hidden, out_size)
    Weights stored as (in, out) so forward is h @ W + b.
    """
    dims = [in_size] + [hidden_size] * (num_layers + 1) + [out_size]
    params = []
    for i in range(len(dims) - 1):
        fan_in, fan_out = dims[i], dims[i + 1]
        key, kw, kb = jax.random.split(key, 3)
        bound = 1.0 / jnp.sqrt(jnp.float32(fan_in))
        w = jax.random.uniform(kw, (fan_in, fan_out), jnp.float32, -bound, bound)
        b = jax.random.uniform(kb, (1, fan_out), jnp.float32, -bound, bound)
        params.append((w, b))
    return params


def brave_reference(x, a, params):
    h = jnp.concatenate([x, a], axis=1)
    n = len(params)
    for i, (w, b) in enumerate(params):
        h = h @ w + b
        if i < n - 1:
            h = jnp.maximum(h, 0.0)
    return h


if __name__ == "__main__":
    key = jax.random.PRNGKey(0)

    # Module-consistent shapes; batch=256 keeps the MXU fed but (per review)
    # stays on a single grid step — splitting sub-microsecond work across
    # TensorCores only adds launch/sync overhead at this size.
    batch = 256
    x_dim = 12
    a_dim = 4
    in_size = x_dim + a_dim            # BraVE's in_size covers concat(x, a)
    num_layers = 2                     # extra hidden Linear+ReLU blocks
    hidden_size = 32
    grid_dimension = 3                 # env.grid_dimension
    out_size = 2 * grid_dimension + 1  # = 7

    kx, ka, kp = jax.random.split(key, 3)
    x = jax.random.normal(kx, (batch, x_dim), jnp.float32)
    a = jax.random.normal(ka, (batch, a_dim), jnp.float32)
    params = init_brave_params(kp, in_size, num_layers, hidden_size, out_size)

    packed, layout, rows, lane_w, din_pad = pack_brave_params(
        params, in_size, hidden_size, out_size, num_layers)

    forward = make_brave_forward(in_size, hidden_size, out_size, num_layers,
                                 batch, layout, rows, lane_w, din_pad)

    out = jax.block_until_ready(forward(x, a, packed))

    ref = brave_reference(x, a, params)
    assert out.shape == (batch, out_size), out.shape
    # bf16 weights/activations with f32 accumulation: loosened vs f32 ref.
    assert jnp.allclose(out, ref, atol=3e-2, rtol=3e-2), "mismatch vs reference"

    print("KERNEL_OK")
</pallas_src>

<mosaic_0001>
module attributes {stable_mosaic.version = 11 : i64} {
  func.func @_brave_kernel(%arg0: i32, %arg1: memref<256x16xbf16, #tpu.memory_space<vmem>>, %arg2: memref<432x128xbf16, #tpu.memory_space<vmem>>, %arg3: memref<256x7xf32, #tpu.memory_space<vmem>>) attributes {dimension_semantics = [#tpu.dimension_semantics<parallel>], iteration_bounds = array<i64: 1>, scalar_prefetch = 0 : i64, scratch_operands = 0 : i64, tpu.core_type = #tpu.core_type<tc>, window_params = [{transform_indices = @transform_0, window_bounds = array<i64: 256, 16>}, {pipeline_mode = #tpu.pipeline_mode<synchronous>, transform_indices = @transform_1, window_bounds = array<i64: 432, 128>}, {transform_indices = @transform_2, window_bounds = array<i64: 256, 7>}]} {
    %c0 = arith.constant 0 : index
    %c0_0 = arith.constant 0 : index
    %0 = vector.load %arg1[%c0, %c0_0] : memref<256x16xbf16, #tpu.memory_space<vmem>>, vector<256x16xbf16>
    %c0_1 = arith.constant 0 : index
    %c0_2 = arith.constant 0 : index
    %1 = vector.load %arg2[%c0_1, %c0_2] : memref<432x128xbf16, #tpu.memory_space<vmem>>, vector<16x128xbf16>
    %cst = arith.constant dense<0.000000e+00> : vector<256x128xf32>
    %2 = tpu.matmul %0, %1, %cst {dimension_numbers = #tpu.dot_dimension_numbers<[1], [0], [0], [1], [0, 0, 1, 1], [], []>} : vector<256x16xbf16>, vector<16x128xbf16>, vector<256x128xf32> -> vector<256x128xf32>
    %c16 = arith.constant 16 : index
    %c0_3 = arith.constant 0 : index
    %3 = vector.load %arg2[%c16, %c0_3] : memref<432x128xbf16, #tpu.memory_space<vmem>>, vector<1x128xbf16>
    %4 = arith.extf %3 : vector<1x128xbf16> to vector<1x128xf32>
    %5 = vector.broadcast %4 : vector<1x128xf32> to vector<256x128xf32>
    %6 = arith.addf %2, %5 : vector<256x128xf32>
    %cst_4 = arith.constant 0.000000e+00 : f32
    %7 = vector.broadcast %cst_4 : f32 to vector<256x128xf32>
    %8 = arith.maximumf %6, %7 : vector<256x128xf32>
    %9 = arith.truncf %8 : vector<256x128xf32> to vector<256x128xbf16>
    %c24 = arith.constant 24 : index
    %c0_5 = arith.constant 0 : index
    %10 = vector.load %arg2[%c24, %c0_5] : memref<432x128xbf16, #tpu.memory_space<vmem>>, vector<128x128xbf16>
    %cst_6 = arith.constant dense<0.000000e+00> : vector<256x128xf32>
    %11 = tpu.matmul %9, %10, %cst_6 {dimension_numbers = #tpu.dot_dimension_numbers<[1], [0], [0], [1], [0, 0, 1, 1], [], []>} : vector<256x128xbf16>, vector<128x128xbf16>, vector<256x128xf32> -> vector<256x128xf32>
    %c152 = arith.constant 152 : index
    %c0_7 = arith.constant 0 : index
    %12 = vector.load %arg2[%c152, %c0_7] : memref<432x128xbf16, #tpu.memory_space<vmem>>, vector<1x128xbf16>
    %13 = arith.extf %12 : vector<1x128xbf16> to vector<1x128xf32>
    %14 = vector.broadcast %13 : vector<1x128xf32> to vector<256x128xf32>
    %15 = arith.addf %11, %14 : vector<256x128xf32>
    %cst_8 = arith.constant 0.000000e+00 : f32
    %16 = vector.broadcast %cst_8 : f32 to vector<256x128xf32>
    %17 = arith.maximumf %15, %16 : vector<256x128xf32>
    %18 = arith.truncf %17 : vector<256x128xf32> to vector<256x128xbf16>
    %c160 = arith.constant 160 : index
    %c0_9 = arith.constant 0 : index
    %19 = vector.load %arg2[%c160, %c0_9] : memref<432x128xbf16, #tpu.memory_space<vmem>>, vector<128x128xbf16>
    %cst_10 = arith.constant dense<0.000000e+00> : vector<256x128xf32>
    %20 = tpu.matmul %18, %19, %cst_10 {dimension_numbers = #tpu.dot_dimension_numbers<[1], [0], [0], [1], [0, 0, 1, 1], [], []>} : vector<256x128xbf16>, vector<128x128xbf16>, vector<256x128xf32> -> vector<256x128xf32>
    %c288 = arith.constant 288 : index
    %c0_11 = arith.constant 0 : index
    %21 = vector.load %arg2[%c288, %c0_11] : memref<432x128xbf16, #tpu.memory_space<vmem>>, vector<1x128xbf16>
    %22 = arith.extf %21 : vector<1x128xbf16> to vector<1x128xf32>
    %23 = vector.broadcast %22 : vector<1x128xf32> to vector<256x128xf32>
    %24 = arith.addf %20, %23 : vector<256x128xf32>
    %cst_12 = arith.constant 0.000000e+00 : f32
    %25 = vector.broadcast %cst_12 : f32 to vector<256x128xf32>
    %26 = arith.maximumf %24, %25 : vector<256x128xf32>
    %27 = arith.truncf %26 : vector<256x128xf32> to vector<256x128xbf16>
    %c296 = arith.constant 296 : index
    %c0_13 = arith.constant 0 : index
    %28 = vector.load %arg2[%c296, %c0_13] : memref<432x128xbf16, #tpu.memory_space<vmem>>, vector<128x128xbf16>
    %cst_14 = arith.constant dense<0.000000e+00> : vector<256x128xf32>
    %29 = tpu.matmul %27, %28, %cst_14 {dimension_numbers = #tpu.dot_dimension_numbers<[1], [0], [0], [1], [0, 0, 1, 1], [], []>} : vector<256x128xbf16>, vector<128x128xbf16>, vector<256x128xf32> -> vector<256x128xf32>
    %c424 = arith.constant 424 : index
    %c0_15 = arith.constant 0 : index
    %30 = vector.load %arg2[%c424, %c0_15] : memref<432x128xbf16, #tpu.memory_space<vmem>>, vector<1x128xbf16>
    %31 = arith.extf %30 : vector<1x128xbf16> to vector<1x128xf32>
    %32 = vector.broadcast %31 : vector<1x128xf32> to vector<256x128xf32>
    %33 = arith.addf %29, %32 : vector<256x128xf32>
    %34 = vector.extract_strided_slice %33 {offsets = [0, 0], sizes = [256, 7], strides = [1, 1]} : vector<256x128xf32> to vector<256x7xf32>
    %c0_16 = arith.constant 0 : index
    %c0_17 = arith.constant 0 : index
    %35 = vector.load %arg3[%c0_16, %c0_17] : memref<256x7xf32, #tpu.memory_space<vmem>>, vector<256x7xf32>
    tpu.vector_store %arg3[%c0_16, %c0_17], %34 {strides = array<i32>} : memref<256x7xf32, #tpu.memory_space<vmem>>, vector<256x7xf32>,
    return
  }
  func.func @transform_0(%arg0: i32) -> (i32, i32) {
    %c0_i32 = arith.constant 0 : i32
    %c0_i32_0 = arith.constant 0 : i32
    return %arg0, %c0_i32 : i32, i32
  }
  func.func @transform_1(%arg0: i32) -> (i32, i32) {
    %c0_i32 = arith.constant 0 : i32
    %c0_i32_0 = arith.constant 0 : i32
    %c0_i32_1 = arith.constant 0 : i32
    return %c0_i32, %c0_i32_0 : i32, i32
  }
  func.func @transform_2(%arg0: i32) -> (i32, i32) {
    %c0_i32 = arith.constant 0 : i32
    %c0_i32_0 = arith.constant 0 : i32
    return %arg0, %c0_i32 : i32, i32
  }
}

</mosaic_0001>

<bundles_post_ra>
// kernel: forward.1
= control target key start
LH: loop header
LB: loop body
LE: loop exit
PB: predicated region body
PF: predicated region fallthrough
CT: control target
= control target key end

     0   :  { %vm138_vm0 = vcmask 130048   ;;  %v48_v32 = vlaneseq  ;;  %vm1185_vm1 = vcmask 56320   ;;  %s2057_s1 = inlined_call_operand.vmem [shape: bf16[432,128], index: 1, kind: input, shape index: {}]   ;;  %s2058_s0 = inlined_call_operand.vmem [shape: bf16[256,16], index: 0, kind: input, shape index: {}]   ;;  %s2059_s2 = inlined_call_operand.vmem [shape: f32[256,7], index: 2, kind: output, shape index: {}]  }
   0x1   :  { %v1562_v0 = vld [vmem:[%s2057_s1] sm:$0xff]   ;;  %v1564_v2 = vld [vmem:[%s2058_s0 + $0x8] sm:$0xff]   ;;  %v1565_v3 = vld [vmem:[%s2058_s0 + $0x10] sm:$0xff]  }
   0x2   :  { %v1563_v1 = vld [vmem:[%s2058_s0] sm:$0xff]   ;;  %1368 = vmatprep.subr.bf16.mxu0 %v1562_v0  ;;  %v1566_v4 = vld [vmem:[%s2058_s0 + $0x18] sm:$0xff]   ;;  %v1568_v6 = vld [vmem:[%s2058_s0 + $0x28] sm:$0xff]   ;;  %v49_v33 = vshrl.u32 %v48_v32, 7 }
   0x3   :  { %1369 = vmatpush3.bf16.msra.mxu0 %v1562_v0  ;;  %1370 = vmatprep.mubr.msk.bf16.mxu0 %vm138_vm0, %v1563_v1  ;;  %v1567_v5 = vld [vmem:[%s2058_s0 + $0x20] sm:$0xff]   ;;  %v1579_v7 = vld [vmem:[%s2057_s1 + $0xc] sm:$0xff]   ;;  %v1580_v8 = vld [vmem:[%s2057_s1 + $0x14] sm:$0xff]  }
   0x4   :  { %v1569_v9 = vld [vmem:[%s2058_s0 + $0x30] sm:$0xff]   ;;  %1402 = vmatprep.subr.bf16.mxu1 %v1579_v7  ;;  %v1581_v10 = vld [vmem:[%s2057_s1 + $0x1c] sm:$0xff]   ;;  %v1582_v11 = vld [vmem:[%s2057_s1 + $0x24] sm:$0xff]   ;;  %v1733_v36 = vsub.s32 0, %v49_v33 }
   0x5   :  { %1403 = vmatpush3.bf16.msra.mxu1 %v1579_v7  ;;  %v1570_v12 = vld [vmem:[%s2058_s0 + $0x38] sm:$0xff]   ;;  %v1571_v13 = vld [vmem:[%s2058_s0 + $0x40] sm:$0xff]   ;;  %v1583_v14 = vld [vmem:[%s2057_s1 + $0x2c] sm:$0xff]  }
   0x6   :  { %1371 = vmatmul.mubr.msk.bf16.vlgmr.msra.gmra.mrb[0].mxu0 %vm138_vm0, %v1564_v2  ;;  %1404 = vmatprep.subr.bf16.mxu1 %v1580_v8  ;;  %v1584_v15 = vld [vmem:[%s2057_s1 + $0x34] sm:$0xff]   ;;  %v1572_v16 = vld [vmem:[%s2058_s0 + $0x48] sm:$0xff]   ;;  %v1575_v19 = vld [vmem:[%s2058_s0 + $0x60] sm:$0xff]  }
   0x7   :  { %1374 = vmatprep.mubr.msk.bf16.mxu0 %vm138_vm0, %v1565_v3  ;;  %v1573_v17 = vld [vmem:[%s2058_s0 + $0x50] sm:$0xff]   ;;  %v1574_v18 = vld [vmem:[%s2058_s0 + $0x58] sm:$0xff]   ;;  %v1576_v20 = vld [vmem:[%s2058_s0 + $0x68] sm:$0xff]  }
   0x8   :  { %v1577_v21 = vld [vmem:[%s2058_s0 + $0x70] sm:$0xff]   ;;  %v1578_v22 = vld [vmem:[%s2058_s0 + $0x78] sm:$0xff]   ;;  %v1586_v24 = vld [vmem:[%s2057_s1 + $0x44] sm:$0xff]  }
   0x9   :  { %1405 = vmatpush3.bf16.msra.mxu1 %v1580_v8  ;;  %v1585_v23 = vld [vmem:[%s2057_s1 + $0x3c] sm:$0xff]   ;;  %v1587_v25 = vld [vmem:[%s2057_s1 + $0x50] sm:$0xff]   ;;  %v1590_v28 = vld [vmem:[%s2057_s1 + $0x68] sm:$0xff]  }
   0xa   :  { %1406 = vmatprep.subr.bf16.mxu1 %v1581_v10  ;;  %v1588_v26 = vld [vmem:[%s2057_s1 + $0x58] sm:$0xff]   ;;  %1450 = vmatprep.subr.bf16.mxu0 %v1587_v25  ;;  %v1589_v27 = vld [vmem:[%s2057_s1 + $0x60] sm:$0xff]   ;;  %v1591_v29 = vld [vmem:[%s2057_s1 + $0x70] sm:$0xff]  }
   0xb   :  { %1451 = vmatpush3.bf16.msra.mxu0 %v1587_v25  ;;  %v1592_v30 = vld [vmem:[%s2057_s1 + $0x78] sm:$0xff]   ;;  %v1593_v31 = vld [vmem:[%s2057_s1 + $0x80] sm:$0xff]   ;;  %v46_v34 = vld [vmem:[%s2057_s1 + $0x8] sm:$0x1] }
   0xc   :  { %1452 = vmatprep.subr.bf16.mxu0 %v1588_v26  ;;  %v47_v35 = vunpack.c.l.bf16 %v46_v34 }
   0xd   :  { %1407 = vmatpush3.bf16.msra.mxu1 %v1581_v10 }
   0xe   :  { %1375 = vmatmul.mubr.msk.bf16.gmra.mrb[4].mxu0 %vm138_vm0, %v1566_v4  ;;  %1408 = vmatprep.subr.bf16.mxu1 %v1582_v11  ;;  %v1736_v37 = vrot.slane %v47_v35, %v1733_v36 }
   0xf   :  { %1378 = vmatprep.mubr.msk.bf16.mxu0 %vm138_vm0, %v1567_v5  ;;  %1453 = vmatpush3.bf16.msra.mxu0 %v1588_v26 }
  0x10   :  { %1454 = vmatprep.subr.bf16.mxu0 %v1589_v27 }
  0x11   :  { %1409 = vmatpush3.bf16.msra.mxu1 %v1582_v11 }
  0x12   :  { %1410 = vmatprep.subr.bf16.mxu1 %v1583_v14 }
  0x13   :  { %1455 = vmatpush3.bf16.msra.mxu0 %v1589_v27 }
  0x14   :  { %1456 = vmatprep.subr.bf16.mxu0 %v1590_v28 }
  0x15   :  { %1411 = vmatpush3.bf16.msra.mxu1 %v1583_v14 }
  0x16   :  { %1379 = vmatmul.mubr.msk.bf16.gmra.mrb[8].mxu0 %vm138_vm0, %v1568_v6  ;;  %1412 = vmatprep.subr.bf16.mxu1 %v1584_v15 }
  0x17   :  { %1382 = vmatprep.mubr.msk.bf16.mxu0 %vm138_vm0, %v1569_v9  ;;  %1457 = vmatpush3.bf16.msra.mxu0 %v1590_v28 }
  0x18   :  { %1458 = vmatprep.subr.bf16.mxu0 %v1591_v29 }
  0x19   :  { %1413 = vmatpush3.bf16.msra.mxu1 %v1584_v15 }
  0x1a   :  { %1414 = vmatprep.subr.bf16.mxu1 %v1585_v23 }
  0x1b   :  { %1459 = vmatpush3.bf16.msra.mxu0 %v1591_v29 }
  0x1c   :  { %1460 = vmatprep.subr.bf16.mxu0 %v1592_v30 }
  0x1d   :  { %1415 = vmatpush3.bf16.msra.mxu1 %v1585_v23 }
  0x1e   :  { %1383 = vmatmul.mubr.msk.bf16.gmra.mrb[12].mxu0 %vm138_vm0, %v1570_v12  ;;  %1416 = vmatprep.subr.bf16.mxu1 %v1586_v24 }
  0x1f   :  { %1386 = vmatprep.mubr.msk.bf16.mxu0 %vm138_vm0, %v1571_v13  ;;  %1461 = vmatpush3.bf16.msra.mxu0 %v1592_v30 }
  0x20   :  { %1462 = vmatprep.subr.bf16.mxu0 %v1593_v31 }
  0x21   :  { %1417 = vmatpush3.bf16.msra.mxu1 %v1586_v24 }
  0x23   :  { %1463 = vmatpush3.bf16.msra.mxu0 %v1593_v31 }
  0x26   :  { %1387 = vmatmul.mubr.msk.bf16.gmra.mrb[16].mxu0 %vm138_vm0, %v1572_v16 }
  0x27   :  { %1390 = vmatprep.mubr.msk.bf16.mxu0 %vm138_vm0, %v1573_v17 }
  0x2e   :  { %1391 = vmatmul.mubr.msk.bf16.gmra.mrb[20].mxu0 %vm138_vm0, %v1574_v18 }
  0x2f   :  { %1394 = vmatprep.mubr.msk.bf16.mxu0 %vm138_vm0, %v1575_v19 }
  0x36   :  { %1395 = vmatmul.mubr.msk.bf16.gmra.mrb[24].mxu0 %vm138_vm0, %v1576_v20 }
  0x37   :  { %1398 = vmatprep.mubr.msk.bf16.mxu0 %vm138_vm0, %v1577_v21 }
  0x3e   :  { %1399 = vmatmul.mubr.msk.bf16.gmra.mrb[28].mxu0 %vm138_vm0, %v1578_v22 }
  0xd9   :  { %v1372_v38 = vpop.f32.mrb[0].mxu0 }
  0xda   :  { %v230_v39 = vadd.f32 %v1372_v38, %v1736_v37  ;;  %v221_v40 = vpop.f32.mrb[1].mxu0 }
  0xdb   :  { %v222_v41 = vadd.f32 %v221_v40, %v1736_v37  ;;  %v1373_v42 = vpop.f32.mrb[2].mxu0 }
  0xdc   :  { %v233_v43 = vadd.f32 %v1373_v42, %v1736_v37  ;;  %v224_v44 = vpop.f32.mrb[3].mxu0  ;;  %v350_v46 = vmax.f32 %v230_v39, 0.0 }
  0xdd   :  { %v225_v45 = vadd.f32 %v224_v44, %v1736_v37  ;;  %v348_v48 = vmax.f32 %v222_v41, 0.0 }
  0xde   :  { %v351_v47 = vmax.f32 %v233_v43, 0.0 }
  0xdf   :  { %v349_v49 = vmax.f32 %v225_v45, 0.0 }
  0xe0   :  { %v381_v50 = vpack.c.bf16 %v351_v47, %v350_v46 }
  0xe1   :  { %v1376_v51 = vpop.f32.mrb[4].mxu0  ;;  %v380_v52 = vpack.c.bf16 %v349_v49, %v348_v48 }
  0xe2   :  { %v246_v53 = vadd.f32 %v1376_v51, %v1736_v37  ;;  %v237_v54 = vpop.f32.mrb[5].mxu0 }
  0xe3   :  { %v238_v55 = vadd.f32 %v237_v54, %v1736_v37  ;;  %v1377_v56 = vpop.f32.mrb[6].mxu0  ;;  %1418 = vmatprep.mubr.bf16.mxu1 %v380_v52 }
  0xe4   :  { %v249_v57 = vadd.f32 %v1377_v56, %v1736_v37  ;;  %v240_v58 = vpop.f32.mrb[7].mxu0  ;;  %1419 = vmatmul.mubr.bf16.vlgmr.msra.gmra.mrb[0].mxu1 %v381_v50  ;;  %v354_v60 = vmax.f32 %v246_v53, 0.0 }
  0xe5   :  { %v241_v59 = vadd.f32 %v240_v58, %v1736_v37  ;;  %v352_v62 = vmax.f32 %v238_v55, 0.0 }
  0xe6   :  { %v355_v61 = vmax.f32 %v249_v57, 0.0 }
  0xe7   :  { %v353_v63 = vmax.f32 %v241_v59, 0.0 }
  0xe8   :  { %v383_v0 = vpack.c.bf16 %v355_v61, %v354_v60 }
  0xe9   :  { %v382_v1 = vpack.c.bf16 %v353_v63, %v352_v62  ;;  %v1380_v2 = vpop.f32.mrb[8].mxu0 }
  0xea   :  { %v262_v3 = vadd.f32 %v1380_v2, %v1736_v37  ;;  %v253_v4 = vpop.f32.mrb[9].mxu0 }
  0xeb   :  { %v254_v5 = vadd.f32 %v253_v4, %v1736_v37  ;;  %v1381_v6 = vpop.f32.mrb[10].mxu0  ;;  %1422 = vmatprep.mubr.bf16.mxu1 %v382_v1 }
  0xec   :  { %v265_v7 = vadd.f32 %v1381_v6, %v1736_v37  ;;  %v256_v8 = vpop.f32.mrb[11].mxu0  ;;  %1423 = vmatmul.mubr.bf16.gmra.mrb[4].mxu1 %v383_v0  ;;  %v358_v10 = vmax.f32 %v262_v3, 0.0 }
  0xed   :  { %v257_v9 = vadd.f32 %v256_v8, %v1736_v37  ;;  %v356_v12 = vmax.f32 %v254_v5, 0.0 }
  0xee   :  { %v359_v11 = vmax.f32 %v265_v7, 0.0 }
  0xef   :  { %v357_v13 = vmax.f32 %v257_v9, 0.0 }
  0xf0   :  { %v385_v14 = vpack.c.bf16 %v359_v11, %v358_v10 }
  0xf1   :  { %v384_v15 = vpack.c.bf16 %v357_v13, %v356_v12  ;;  %v1384_v16 = vpop.f32.mrb[12].mxu0 }
  0xf2   :  { %v278_v17 = vadd.f32 %v1384_v16, %v1736_v37  ;;  %v269_v18 = vpop.f32.mrb[13].mxu0 }
  0xf3   :  { %v270_v19 = vadd.f32 %v269_v18, %v1736_v37  ;;  %v1385_v20 = vpop.f32.mrb[14].mxu0  ;;  %1426 = vmatprep.mubr.bf16.mxu1 %v384_v15 }
  0xf4   :  { %v281_v21 = vadd.f32 %v1385_v20, %v1736_v37  ;;  %v272_v22 = vpop.f32.mrb[15].mxu0  ;;  %1427 = vmatmul.mubr.bf16.gmra.mrb[8].mxu1 %v385_v14  ;;  %v362_v24 = vmax.f32 %v278_v17, 0.0 }
  0xf5   :  { %v273_v23 = vadd.f32 %v272_v22, %v1736_v37  ;;  %v360_v26 = vmax.f32 %v270_v19, 0.0 }
  0xf6   :  { %v363_v25 = vmax.f32 %v281_v21, 0.0 }
  0xf7   :  { %v361_v27 = vmax.f32 %v273_v23, 0.0 }
  0xf8   :  { %v387_v28 = vpack.c.bf16 %v363_v25, %v362_v24  ;;  %v1594_v24 = vld [vmem:[%s2057_s1 + $0x88] sm:$0xff]   ;;  %v1595_v25 = vld [vmem:[%s2057_s1 + $0x94] sm:$0xff]  }
  0xf9   :  { %v386_v29 = vpack.c.bf16 %v361_v27, %v360_v26  ;;  %v1388_v30 = vpop.f32.mrb[16].mxu0  ;;  %1464 = vmatprep.subr.bf16.mxu0 %v1594_v24  ;;  %1546 = vmatprep.subr.bf16.mxu1 %v1595_v25  ;;  %v1597_v26 = vld [vmem:[%s2057_s1 + $0xa4] sm:$0xff]   ;;  %v1785_v27 = vld [vmem:[%s2057_s1 + $0xac] sm:$0xff]  }
  0xfa   :  { %v294_v31 = vadd.f32 %v1388_v30, %v1736_v37  ;;  %v285_v32 = vpop.f32.mrb[17].mxu0  ;;  %1465 = vmatpush3.bf16.msra.mxu0 %v1594_v24  ;;  %1554 = vmatpush3.bf16.msra.mxu1 %v1595_v25  ;;  %v412_v30 = vld [vmem:[%s2057_s1 + $0x4c] sm:$0x1] }
  0xfb   :  { %v286_v33 = vadd.f32 %v285_v32, %v1736_v37  ;;  %v1389_v34 = vpop.f32.mrb[18].mxu0  ;;  %1430 = vmatprep.mubr.bf16.mxu1 %v386_v29  ;;  %1498 = vmatprep.subr.bf16.mxu0 %v1595_v25  ;;  %v1798_v29 = vld [vmem:[%s2057_s1 + $0xbc] sm:$0xff]  }
  0xfc   :  { %v297_v35 = vadd.f32 %v1389_v34, %v1736_v37  ;;  %v288_v38 = vpop.f32.mrb[19].mxu0  ;;  %1431 = vmatmul.mubr.bf16.gmra.mrb[12].mxu1 %v387_v28  ;;  %v366_v40 = vmax.f32 %v294_v31, 0.0  ;;  %v1791_v28 = vld [vmem:[%s2057_s1 + $0xb4] sm:$0xff]   ;;  %v413_v31 = vunpack.c.l.bf16 %v412_v30 }
  0xfd   :  { %v289_v39 = vadd.f32 %v288_v38, %v1736_v37  ;;  %v364_v42 = vmax.f32 %v286_v33, 0.0 }
  0xfe   :  { %v367_v41 = vmax.f32 %v297_v35, 0.0  ;;  %v1807_v32 = vrot.slane %v413_v31, %v1733_v36 }
  0xff   :  { %v365_v43 = vmax.f32 %v289_v39, 0.0 }
 0x100   :  { %v389_v44 = vpack.c.bf16 %v367_v41, %v366_v40 }
 0x101   :  { %v388_v45 = vpack.c.bf16 %v365_v43, %v364_v42  ;;  %v1392_v46 = vpop.f32.mrb[20].mxu0 }
 0x102   :  { %v310_v47 = vadd.f32 %v1392_v46, %v1736_v37  ;;  %v301_v48 = vpop.f32.mrb[21].mxu0 }
 0x103   :  { %v302_v49 = vadd.f32 %v301_v48, %v1736_v37  ;;  %v1393_v50 = vpop.f32.mrb[22].mxu0  ;;  %1434 = vmatprep.mubr.bf16.mxu1 %v388_v45 }
 0x104   :  { %v313_v51 = vadd.f32 %v1393_v50, %v1736_v37  ;;  %v304_v52 = vpop.f32.mrb[23].mxu0  ;;  %1435 = vmatmul.mubr.bf16.gmra.mrb[16].mxu1 %v389_v44  ;;  %v370_v54 = vmax.f32 %v310_v47, 0.0 }
 0x105   :  { %v305_v53 = vadd.f32 %v304_v52, %v1736_v37  ;;  %v368_v56 = vmax.f32 %v302_v49, 0.0 }
 0x106   :  { %v371_v55 = vmax.f32 %v313_v51, 0.0 }
 0x107   :  { %v369_v57 = vmax.f32 %v305_v53, 0.0 }
 0x108   :  { %v391_v58 = vpack.c.bf16 %v371_v55, %v370_v54 }
 0x109   :  { %v390_v59 = vpack.c.bf16 %v369_v57, %v368_v56  ;;  %v1396_v60 = vpop.f32.mrb[24].mxu0 }
 0x10a   :  { %v326_v61 = vadd.f32 %v1396_v60, %v1736_v37  ;;  %v317_v62 = vpop.f32.mrb[25].mxu0 }
 0x10b   :  { %v318_v63 = vadd.f32 %v317_v62, %v1736_v37  ;;  %v1397_v0 = vpop.f32.mrb[26].mxu0  ;;  %1438 = vmatprep.mubr.bf16.mxu1 %v390_v59 }
 0x10c   :  { %v329_v1 = vadd.f32 %v1397_v0, %v1736_v37  ;;  %v320_v2 = vpop.f32.mrb[27].mxu0  ;;  %1439 = vmatmul.mubr.bf16.gmra.mrb[20].mxu1 %v391_v58  ;;  %v374_v4 = vmax.f32 %v326_v61, 0.0 }
 0x10d   :  { %v321_v3 = vadd.f32 %v320_v2, %v1736_v37  ;;  %v372_v6 = vmax.f32 %v318_v63, 0.0 }
 0x10e   :  { %v375_v5 = vmax.f32 %v329_v1, 0.0 }
 0x10f   :  { %v373_v7 = vmax.f32 %v321_v3, 0.0 }
 0x110   :  { %v393_v8 = vpack.c.bf16 %v375_v5, %v374_v4 }
 0x111   :  { %v392_v9 = vpack.c.bf16 %v373_v7, %v372_v6  ;;  %v1400_v10 = vpop.f32.mrb[28].mxu0 }
 0x112   :  { %v342_v11 = vadd.f32 %v1400_v10, %v1736_v37  ;;  %v333_v12 = vpop.f32.mrb[29].mxu0 }
 0x113   :  { %v334_v13 = vadd.f32 %v333_v12, %v1736_v37  ;;  %v1401_v14 = vpop.f32.mrb[30].mxu0  ;;  %1442 = vmatprep.mubr.bf16.mxu1 %v392_v9 }
 0x114   :  { %v345_v15 = vadd.f32 %v1401_v14, %v1736_v37  ;;  %v336_v16 = vpop.f32.mrb[31].mxu0  ;;  %1443 = vmatmul.mubr.bf16.gmra.mrb[24].mxu1 %v393_v8  ;;  %v378_v18 = vmax.f32 %v342_v11, 0.0 }
 0x115   :  { %v337_v17 = vadd.f32 %v336_v16, %v1736_v37  ;;  %v376_v20 = vmax.f32 %v334_v13, 0.0  ;;  %v1596_v37 = vld [vmem:[%s2057_s1 + $0x9c] sm:$0xff]  }
 0x116   :  { %v379_v19 = vmax.f32 %v345_v15, 0.0  ;;  %1547 = vmatprep.subr.bf16.mxu1 %v1596_v37 }
 0x117   :  { %v377_v21 = vmax.f32 %v337_v17, 0.0  ;;  %1555 = vmatpush3.bf16.msra.mxu1 %v1596_v37 }
 0x118   :  { %v395_v22 = vpack.c.bf16 %v379_v19, %v378_v18  ;;  %1548 = vmatprep.subr.bf16.mxu1 %v1597_v26 }
 0x119   :  { %v394_v23 = vpack.c.bf16 %v377_v21, %v376_v20 }
 0x11b   :  { %1446 = vmatprep.mubr.bf16.mxu1 %v394_v23  ;;  %1556 = vmatpush3.bf16.msra.mxu1 %v1597_v26 }
 0x11c   :  { %1447 = vmatmul.mubr.bf16.gmra.mrb[28].mxu1 %v395_v22  ;;  %1549 = vmatprep.subr.bf16.mxu1 %v1785_v27 }
 0x11f   :  { %1557 = vmatpush3.bf16.msra.mxu1 %v1785_v27 }
 0x120   :  { %1550 = vmatprep.subr.bf16.mxu1 %v1791_v28 }
 0x123   :  { %1558 = vmatpush3.bf16.msra.mxu1 %v1791_v28 }
 0x124   :  { %1551 = vmatprep.subr.bf16.mxu1 %v1798_v29 }
 0x127   :  { %1559 = vmatpush3.bf16.msra.mxu1 %v1798_v29 }
 0x1b7   :  { %v1420_v33 = vpop.f32.mrb[0].mxu1 }
 0x1b8   :  { %v509_v34 = vadd.f32 %v1420_v33, %v1807_v32  ;;  %v500_v35 = vpop.f32.mrb[1].mxu1 }
 0x1b9   :  { %v501_v38 = vadd.f32 %v500_v35, %v1807_v32  ;;  %v1421_v39 = vpop.f32.mrb[2].mxu1 }
 0x1ba   :  { %v512_v40 = vadd.f32 %v1421_v39, %v1807_v32  ;;  %v503_v41 = vpop.f32.mrb[3].mxu1  ;;  %v629_v43 = vmax.f32 %v509_v34, 0.0 }
 0x1bb   :  { %v504_v42 = vadd.f32 %v503_v41, %v1807_v32  ;;  %v627_v45 = vmax.f32 %v501_v38, 0.0 }
 0x1bc   :  { %v630_v44 = vmax.f32 %v512_v40, 0.0 }
 0x1bd   :  { %v628_v46 = vmax.f32 %v504_v42, 0.0 }
 0x1be   :  { %v660_v47 = vpack.c.bf16 %v630_v44, %v629_v43 }
 0x1bf   :  { %v659_v48 = vpack.c.bf16 %v628_v46, %v627_v45  ;;  %v1424_v49 = vpop.f32.mrb[4].mxu1 }
 0x1c0   :  { %v525_v50 = vadd.f32 %v1424_v49, %v1807_v32  ;;  %v516_v51 = vpop.f32.mrb[5].mxu1 }
 0x1c1   :  { %v517_v52 = vadd.f32 %v516_v51, %v1807_v32  ;;  %v1425_v53 = vpop.f32.mrb[6].mxu1  ;;  %1466 = vmatprep.mubr.bf16.mxu0 %v659_v48 }
 0x1c2   :  { %v528_v54 = vadd.f32 %v1425_v53, %v1807_v32  ;;  %v519_v55 = vpop.f32.mrb[7].mxu1  ;;  %1467 = vmatmul.mubr.bf16.vlgmr.msra.gmra.mrb[32].mxu0 %v660_v47  ;;  %v633_v57 = vmax.f32 %v525_v50, 0.0 }
 0x1c3   :  { %v520_v56 = vadd.f32 %v519_v55, %v1807_v32  ;;  %1499 = vmatpush3.bf16.msra.mxu0 %v1595_v25  ;;  %v631_v59 = vmax.f32 %v517_v52, 0.0 }
 0x1c4   :  { %v634_v58 = vmax.f32 %v528_v54, 0.0  ;;  %1500 = vmatprep.subr.bf16.mxu0 %v1596_v37 }
 0x1c5   :  { %v632_v60 = vmax.f32 %v520_v56, 0.0 }
 0x1c6   :  { %v662_v61 = vpack.c.bf16 %v634_v58, %v633_v57 }
 0x1c7   :  { %v661_v62 = vpack.c.bf16 %v632_v60, %v631_v59  ;;  %v1428_v63 = vpop.f32.mrb[8].mxu1  ;;  %1501 = vmatpush3.bf16.msra.mxu0 %v1596_v37 }
 0x1c8   :  { %v541_v0 = vadd.f32 %v1428_v63, %v1807_v32  ;;  %v532_v1 = vpop.f32.mrb[9].mxu1  ;;  %1502 = vmatprep.subr.bf16.mxu0 %v1597_v26 }
 0x1c9   :  { %v533_v2 = vadd.f32 %v532_v1, %v1807_v32  ;;  %v1429_v3 = vpop.f32.mrb[10].mxu1  ;;  %1470 = vmatprep.mubr.bf16.mxu0 %v661_v62 }
 0x1ca   :  { %v544_v4 = vadd.f32 %v1429_v3, %v1807_v32  ;;  %v535_v5 = vpop.f32.mrb[11].mxu1  ;;  %1471 = vmatmul.mubr.bf16.gmra.mrb[36].mxu0 %v662_v61  ;;  %v637_v7 = vmax.f32 %v541_v0, 0.0 }
 0x1cb   :  { %v536_v6 = vadd.f32 %v535_v5, %v1807_v32  ;;  %1503 = vmatpush3.bf16.msra.mxu0 %v1597_v26  ;;  %v635_v9 = vmax.f32 %v533_v2, 0.0 }
 0x1cc   :  { %v638_v8 = vmax.f32 %v544_v4, 0.0  ;;  %1504 = vmatprep.subr.bf16.mxu0 %v1785_v27 }
 0x1cd   :  { %v636_v10 = vmax.f32 %v536_v6, 0.0 }
 0x1ce   :  { %v664_v11 = vpack.c.bf16 %v638_v8, %v637_v7 }
 0x1cf   :  { %v663_v12 = vpack.c.bf16 %v636_v10, %v635_v9  ;;  %v1432_v13 = vpop.f32.mrb[12].mxu1  ;;  %1505 = vmatpush3.bf16.msra.mxu0 %v1785_v27 }
 0x1d0   :  { %v557_v14 = vadd.f32 %v1432_v13, %v1807_v32  ;;  %v548_v15 = vpop.f32.mrb[13].mxu1  ;;  %1506 = vmatprep.subr.bf16.mxu0 %v1791_v28 }
 0x1d1   :  { %v549_v16 = vadd.f32 %v548_v15, %v1807_v32  ;;  %v1433_v17 = vpop.f32.mrb[14].mxu1  ;;  %1474 = vmatprep.mubr.bf16.mxu0 %v663_v12 }
 0x1d2   :  { %v560_v18 = vadd.f32 %v1433_v17, %v1807_v32  ;;  %v551_v19 = vpop.f32.mrb[15].mxu1  ;;  %1475 = vmatmul.mubr.bf16.gmra.mrb[40].mxu0 %v664_v11  ;;  %v641_v21 = vmax.f32 %v557_v14, 0.0 }
 0x1d3   :  { %v552_v20 = vadd.f32 %v551_v19, %v1807_v32  ;;  %1507 = vmatpush3.bf16.msra.mxu0 %v1791_v28  ;;  %v639_v23 = vmax.f32 %v549_v16, 0.0 }
 0x1d4   :  { %v642_v22 = vmax.f32 %v560_v18, 0.0  ;;  %1508 = vmatprep.subr.bf16.mxu0 %v1798_v29 }
 0x1d5   :  { %v640_v24 = vmax.f32 %v552_v20, 0.0 }
 0x1d6   :  { %v666_v25 = vpack.c.bf16 %v642_v22, %v641_v21  ;;  %v1601_v21 = vld [vmem:[%s2057_s1 + $0xc4] sm:$0xff]   ;;  %v691_v22 = vld [vmem:[%s2057_s1 + $0x90] sm:$0x1] }
 0x1d7   :  { %v665_v37 = vpack.c.bf16 %v640_v24, %v639_v23  ;;  %v1436_v26 = vpop.f32.mrb[16].mxu1  ;;  %1509 = vmatpush3.bf16.msra.mxu0 %v1798_v29  ;;  %1552 = vmatprep.subr.bf16.mxu1 %v1601_v21  ;;  %v692_v23 = vunpack.c.l.bf16 %v691_v22 }
 0x1d8   :  { %v573_v27 = vadd.f32 %v1436_v26, %v1807_v32  ;;  %v564_v30 = vpop.f32.mrb[17].mxu1  ;;  %1510 = vmatprep.subr.bf16.mxu0 %v1601_v21  ;;  %1560 = vmatpush3.bf16.msra.mxu1 %v1601_v21 }
 0x1d9   :  { %v565_v31 = vadd.f32 %v564_v30, %v1807_v32  ;;  %v1437_v33 = vpop.f32.mrb[18].mxu1  ;;  %1478 = vmatprep.mubr.bf16.mxu0 %v665_v37  ;;  %v1857_v24 = vrot.slane %v692_v23, %v1733_v36 }
 0x1da   :  { %v576_v28 = vadd.f32 %v1437_v33, %v1807_v32  ;;  %v567_v34 = vpop.f32.mrb[19].mxu1  ;;  %1479 = vmatmul.mubr.bf16.gmra.mrb[44].mxu0 %v666_v25  ;;  %v645_v38 = vmax.f32 %v573_v27, 0.0 }
 0x1db   :  { %v568_v35 = vadd.f32 %v567_v34, %v1807_v32  ;;  %v643_v40 = vmax.f32 %v565_v31, 0.0  ;;  %1511 = vmatpush3.bf16.msra.mxu0 %v1601_v21 }
 0x1dc   :  { %v646_v39 = vmax.f32 %v576_v28, 0.0 }
 0x1dd   :  { %v644_v41 = vmax.f32 %v568_v35, 0.0 }
 0x1de   :  { %v668_v42 = vpack.c.bf16 %v646_v39, %v645_v38 }
 0x1df   :  { %v667_v43 = vpack.c.bf16 %v644_v41, %v643_v40  ;;  %v1440_v29 = vpop.f32.mrb[20].mxu1 }
 0x1e0   :  { %v589_v44 = vadd.f32 %v1440_v29, %v1807_v32  ;;  %v580_v45 = vpop.f32.mrb[21].mxu1 }
 0x1e1   :  { %v581_v46 = vadd.f32 %v580_v45, %v1807_v32  ;;  %v1441_v47 = vpop.f32.mrb[22].mxu1  ;;  %1482 = vmatprep.mubr.bf16.mxu0 %v667_v43 }
 0x1e2   :  { %v592_v48 = vadd.f32 %v1441_v47, %v1807_v32  ;;  %v583_v49 = vpop.f32.mrb[23].mxu1  ;;  %1483 = vmatmul.mubr.bf16.gmra.mrb[48].mxu0 %v668_v42  ;;  %v649_v51 = vmax.f32 %v589_v44, 0.0 }
 0x1e3   :  { %v584_v50 = vadd.f32 %v583_v49, %v1807_v32  ;;  %v647_v53 = vmax.f32 %v581_v46, 0.0 }
 0x1e4   :  { %v650_v52 = vmax.f32 %v592_v48, 0.0 }
 0x1e5   :  { %v648_v54 = vmax.f32 %v584_v50, 0.0 }
 0x1e6   :  { %v670_v55 = vpack.c.bf16 %v650_v52, %v649_v51 }
 0x1e7   :  { %v669_v56 = vpack.c.bf16 %v648_v54, %v647_v53  ;;  %v1444_v57 = vpop.f32.mrb[24].mxu1 }
 0x1e8   :  { %v605_v58 = vadd.f32 %v1444_v57, %v1807_v32  ;;  %v596_v59 = vpop.f32.mrb[25].mxu1 }
 0x1e9   :  { %v597_v60 = vadd.f32 %v596_v59, %v1807_v32  ;;  %v1445_v61 = vpop.f32.mrb[26].mxu1  ;;  %1486 = vmatprep.mubr.bf16.mxu0 %v669_v56 }
 0x1ea   :  { %v608_v62 = vadd.f32 %v1445_v61, %v1807_v32  ;;  %v599_v63 = vpop.f32.mrb[27].mxu1  ;;  %1487 = vmatmul.mubr.bf16.gmra.mrb[52].mxu0 %v670_v55  ;;  %v653_v1 = vmax.f32 %v605_v58, 0.0 }
 0x1eb   :  { %v600_v0 = vadd.f32 %v599_v63, %v1807_v32  ;;  %v651_v3 = vmax.f32 %v597_v60, 0.0 }
 0x1ec   :  { %v654_v2 = vmax.f32 %v608_v62, 0.0 }
 0x1ed   :  { %v652_v4 = vmax.f32 %v600_v0, 0.0 }
 0x1ee   :  { %v672_v5 = vpack.c.bf16 %v654_v2, %v653_v1 }
 0x1ef   :  { %v671_v6 = vpack.c.bf16 %v652_v4, %v651_v3  ;;  %v1448_v7 = vpop.f32.mrb[28].mxu1 }
 0x1f0   :  { %v621_v8 = vadd.f32 %v1448_v7, %v1807_v32  ;;  %v612_v9 = vpop.f32.mrb[29].mxu1 }
 0x1f1   :  { %v613_v10 = vadd.f32 %v612_v9, %v1807_v32  ;;  %v1449_v11 = vpop.f32.mrb[30].mxu1  ;;  %1490 = vmatprep.mubr.bf16.mxu0 %v671_v6 }
 0x1f2   :  { %v624_v12 = vadd.f32 %v1449_v11, %v1807_v32  ;;  %v615_v13 = vpop.f32.mrb[31].mxu1  ;;  %1491 = vmatmul.mubr.bf16.gmra.mrb[56].mxu0 %v672_v5  ;;  %v657_v15 = vmax.f32 %v621_v8, 0.0 }
 0x1f3   :  { %v616_v14 = vadd.f32 %v615_v13, %v1807_v32  ;;  %v655_v17 = vmax.f32 %v613_v10, 0.0  ;;  %v1602_v32 = vld [vmem:[%s2057_s1 + $0xcc] sm:$0xff]  }
 0x1f4   :  { %v658_v16 = vmax.f32 %v624_v12, 0.0  ;;  %1512 = vmatprep.subr.bf16.mxu0 %v1602_v32  ;;  %1553 = vmatprep.subr.bf16.mxu1 %v1602_v32 }
 0x1f5   :  { %v656_v18 = vmax.f32 %v616_v14, 0.0  ;;  %1513 = vmatpush3.bf16.msra.mxu0 %v1602_v32  ;;  %1561 = vmatpush3.bf16.msra.mxu1 %v1602_v32 }
 0x1f6   :  { %v674_v19 = vpack.c.bf16 %v658_v16, %v657_v15 }
 0x1f7   :  { %v673_v20 = vpack.c.bf16 %v656_v18, %v655_v17 }
 0x1f9   :  { %1494 = vmatprep.mubr.bf16.mxu0 %v673_v20 }
 0x1fa   :  { %1495 = vmatmul.mubr.bf16.gmra.mrb[60].mxu0 %v674_v19 }
 0x295   :  { %v1468_v25 = vpop.f32.mrb[32].mxu0 }
 0x296   :  { %v788_v37 = vadd.f32 %v1468_v25, %v1857_v24  ;;  %v779_v26 = vpop.f32.mrb[33].mxu0 }
 0x297   :  { %v780_v27 = vadd.f32 %v779_v26, %v1857_v24  ;;  %v1469_v30 = vpop.f32.mrb[34].mxu0 }
 0x298   :  { %v791_v31 = vadd.f32 %v1469_v30, %v1857_v24  ;;  %v782_v33 = vpop.f32.mrb[35].mxu0  ;;  %v908_v34 = vmax.f32 %v788_v37, 0.0 }
 0x299   :  { %v783_v28 = vadd.f32 %v782_v33, %v1857_v24  ;;  %v906_v38 = vmax.f32 %v780_v27, 0.0 }
 0x29a   :  { %v909_v35 = vmax.f32 %v791_v31, 0.0 }
 0x29b   :  { %v907_v39 = vmax.f32 %v783_v28, 0.0 }
 0x29c   :  { %v939_v40 = vpack.c.bf16 %v909_v35, %v908_v34 }
 0x29d   :  { %v938_v41 = vpack.c.bf16 %v907_v39, %v906_v38  ;;  %v1472_v42 = vpop.f32.mrb[36].mxu0 }
 0x29e   :  { %v804_v43 = vadd.f32 %v1472_v42, %v1857_v24  ;;  %v795_v29 = vpop.f32.mrb[37].mxu0 }
 0x29f   :  { %v796_v44 = vadd.f32 %v795_v29, %v1857_v24  ;;  %v1473_v45 = vpop.f32.mrb[38].mxu0  ;;  %1514 = vmatprep.mubr.bf16.mxu0 %v938_v41 }
 0x2a0   :  { %v807_v46 = vadd.f32 %v1473_v45, %v1857_v24  ;;  %v798_v47 = vpop.f32.mrb[39].mxu0  ;;  %1515 = vmatmul.mubr.bf16.vlgmr.msra.gmra.mrb[64].mxu0 %v939_v40  ;;  %v912_v49 = vmax.f32 %v804_v43, 0.0 }
 0x2a1   :  { %v799_v48 = vadd.f32 %v798_v47, %v1857_v24  ;;  %v910_v51 = vmax.f32 %v796_v44, 0.0 }
 0x2a2   :  { %v913_v50 = vmax.f32 %v807_v46, 0.0 }
 0x2a3   :  { %v911_v52 = vmax.f32 %v799_v48, 0.0 }
 0x2a4   :  { %v941_v53 = vpack.c.bf16 %v913_v50, %v912_v49 }
 0x2a5   :  { %v940_v54 = vpack.c.bf16 %v911_v52, %v910_v51  ;;  %v1476_v55 = vpop.f32.mrb[40].mxu0 }
 0x2a6   :  { %v820_v56 = vadd.f32 %v1476_v55, %v1857_v24  ;;  %v811_v57 = vpop.f32.mrb[41].mxu0 }
 0x2a7   :  { %v812_v58 = vadd.f32 %v811_v57, %v1857_v24  ;;  %v1477_v59 = vpop.f32.mrb[42].mxu0  ;;  %1518 = vmatprep.mubr.bf16.mxu1 %v940_v54 }
 0x2a8   :  { %v823_v60 = vadd.f32 %v1477_v59, %v1857_v24  ;;  %v814_v61 = vpop.f32.mrb[43].mxu0  ;;  %1519 = vmatmul.mubr.bf16.vlgmr.msra.gmra.mrb[32].mxu1 %v941_v53  ;;  %v916_v63 = vmax.f32 %v820_v56, 0.0 }
 0x2a9   :  { %v815_v62 = vadd.f32 %v814_v61, %v1857_v24  ;;  %v914_v1 = vmax.f32 %v812_v58, 0.0 }
 0x2aa   :  { %v917_v0 = vmax.f32 %v823_v60, 0.0 }
 0x2ab   :  { %v915_v2 = vmax.f32 %v815_v62, 0.0 }
 0x2ac   :  { %v943_v3 = vpack.c.bf16 %v917_v0, %v916_v63 }
 0x2ad   :  { %v942_v4 = vpack.c.bf16 %v915_v2, %v914_v1  ;;  %v1480_v5 = vpop.f32.mrb[44].mxu0 }
 0x2ae   :  { %v836_v6 = vadd.f32 %v1480_v5, %v1857_v24  ;;  %v827_v7 = vpop.f32.mrb[45].mxu0 }
 0x2af   :  { %v828_v8 = vadd.f32 %v827_v7, %v1857_v24  ;;  %v1481_v9 = vpop.f32.mrb[46].mxu0  ;;  %1522 = vmatprep.mubr.bf16.mxu1 %v942_v4 }
 0x2b0   :  { %v839_v10 = vadd.f32 %v1481_v9, %v1857_v24  ;;  %v830_v11 = vpop.f32.mrb[47].mxu0  ;;  %1523 = vmatmul.mubr.bf16.gmra.mrb[36].mxu1 %v943_v3  ;;  %v920_v13 = vmax.f32 %v836_v6, 0.0 }
 0x2b1   :  { %v831_v12 = vadd.f32 %v830_v11, %v1857_v24  ;;  %v918_v15 = vmax.f32 %v828_v8, 0.0 }
 0x2b2   :  { %v921_v14 = vmax.f32 %v839_v10, 0.0 }
 0x2b3   :  { %v919_v16 = vmax.f32 %v831_v12, 0.0 }
 0x2b4   :  { %v945_v17 = vpack.c.bf16 %v921_v14, %v920_v13  ;;  %v970_v13 = vld [vmem:[%s2057_s1 + $0xd4] sm:$0x1] }
 0x2b5   :  { %v944_v18 = vpack.c.bf16 %v919_v16, %v918_v15  ;;  %v1484_v19 = vpop.f32.mrb[48].mxu0  ;;  %v971_v14 = vunpack.c.l.bf16 %v970_v13 }
 0x2b6   :  { %v852_v20 = vadd.f32 %v1484_v19, %v1857_v24  ;;  %v843_v21 = vpop.f32.mrb[49].mxu0 }
 0x2b7   :  { %v844_v32 = vadd.f32 %v843_v21, %v1857_v24  ;;  %v1485_v22 = vpop.f32.mrb[50].mxu0  ;;  %1526 = vmatprep.mubr.bf16.mxu1 %v944_v18  ;;  %v1895_v15 = vrot.slane %v971_v14, %v1733_v36 }
 0x2b8   :  { %v855_v23 = vadd.f32 %v1485_v22, %v1857_v24  ;;  %v846_v25 = vpop.f32.mrb[51].mxu0  ;;  %1527 = vmatmul.mubr.bf16.gmra.mrb[40].mxu1 %v945_v17  ;;  %v924_v26 = vmax.f32 %v852_v20, 0.0 }
 0x2b9   :  { %v847_v37 = vadd.f32 %v846_v25, %v1857_v24  ;;  %v922_v30 = vmax.f32 %v844_v32, 0.0 }
 0x2ba   :  { %v925_v27 = vmax.f32 %v855_v23, 0.0 }
 0x2bb   :  { %v923_v31 = vmax.f32 %v847_v37, 0.0 }
 0x2bc   :  { %v947_v33 = vpack.c.bf16 %v925_v27, %v924_v26 }
 0x2bd   :  { %v946_v28 = vpack.c.bf16 %v923_v31, %v922_v30  ;;  %v1488_v34 = vpop.f32.mrb[52].mxu0 }
 0x2be   :  { %v868_v35 = vadd.f32 %v1488_v34, %v1857_v24  ;;  %v859_v38 = vpop.f32.mrb[53].mxu0 }
 0x2bf   :  { %v860_v39 = vadd.f32 %v859_v38, %v1857_v24  ;;  %v1489_v40 = vpop.f32.mrb[54].mxu0  ;;  %1530 = vmatprep.mubr.bf16.mxu1 %v946_v28 }
 0x2c0   :  { %v871_v41 = vadd.f32 %v1489_v40, %v1857_v24  ;;  %v862_v42 = vpop.f32.mrb[55].mxu0  ;;  %1531 = vmatmul.mubr.bf16.gmra.mrb[44].mxu1 %v947_v33  ;;  %v928_v29 = vmax.f32 %v868_v35, 0.0 }
 0x2c1   :  { %v863_v43 = vadd.f32 %v862_v42, %v1857_v24  ;;  %v926_v45 = vmax.f32 %v860_v39, 0.0 }
 0x2c2   :  { %v929_v44 = vmax.f32 %v871_v41, 0.0 }
 0x2c3   :  { %v927_v46 = vmax.f32 %v863_v43, 0.0 }
 0x2c4   :  { %v949_v47 = vpack.c.bf16 %v929_v44, %v928_v29 }
 0x2c5   :  { %v948_v48 = vpack.c.bf16 %v927_v46, %v926_v45  ;;  %v1492_v49 = vpop.f32.mrb[56].mxu0 }
 0x2c6   :  { %v884_v50 = vadd.f32 %v1492_v49, %v1857_v24  ;;  %v875_v51 = vpop.f32.mrb[57].mxu0 }
 0x2c7   :  { %v876_v52 = vadd.f32 %v875_v51, %v1857_v24  ;;  %v1493_v53 = vpop.f32.mrb[58].mxu0  ;;  %1534 = vmatprep.mubr.bf16.mxu1 %v948_v48 }
 0x2c8   :  { %v887_v54 = vadd.f32 %v1493_v53, %v1857_v24  ;;  %v878_v55 = vpop.f32.mrb[59].mxu0  ;;  %1535 = vmatmul.mubr.bf16.gmra.mrb[48].mxu1 %v949_v47  ;;  %v932_v57 = vmax.f32 %v884_v50, 0.0 }
 0x2c9   :  { %v879_v56 = vadd.f32 %v878_v55, %v1857_v24  ;;  %v930_v59 = vmax.f32 %v876_v52, 0.0 }
 0x2ca   :  { %v933_v58 = vmax.f32 %v887_v54, 0.0 }
 0x2cb   :  { %v931_v60 = vmax.f32 %v879_v56, 0.0 }
 0x2cc   :  { %v951_v61 = vpack.c.bf16 %v933_v58, %v932_v57 }
 0x2cd   :  { %v950_v62 = vpack.c.bf16 %v931_v60, %v930_v59  ;;  %v1496_v63 = vpop.f32.mrb[60].mxu0 }
 0x2ce   :  { %v900_v0 = vadd.f32 %v1496_v63, %v1857_v24  ;;  %v891_v1 = vpop.f32.mrb[61].mxu0 }
 0x2cf   :  { %v892_v2 = vadd.f32 %v891_v1, %v1857_v24  ;;  %v1497_v3 = vpop.f32.mrb[62].mxu0  ;;  %1538 = vmatprep.mubr.bf16.mxu1 %v950_v62 }
 0x2d0   :  { %v903_v4 = vadd.f32 %v1497_v3, %v1857_v24  ;;  %v894_v5 = vpop.f32.mrb[63].mxu0  ;;  %1539 = vmatmul.mubr.bf16.gmra.mrb[52].mxu1 %v951_v61  ;;  %v936_v7 = vmax.f32 %v900_v0, 0.0 }
 0x2d1   :  { %v895_v6 = vadd.f32 %v894_v5, %v1857_v24  ;;  %v934_v9 = vmax.f32 %v892_v2, 0.0 }
 0x2d2   :  { %v937_v8 = vmax.f32 %v903_v4, 0.0 }
 0x2d3   :  { %v935_v10 = vmax.f32 %v895_v6, 0.0 }
 0x2d4   :  { %v953_v11 = vpack.c.bf16 %v937_v8, %v936_v7 }
 0x2d5   :  { %v952_v12 = vpack.c.bf16 %v935_v10, %v934_v9 }
 0x2d7   :  { %1542 = vmatprep.mubr.bf16.mxu1 %v952_v12 }
 0x2d8   :  { %1543 = vmatmul.mubr.bf16.gmra.mrb[56].mxu1 %v953_v11 }
 0x373   :  { %v1516_v16 = vpop.f32.mrb[64].mxu0 }
 0x374   :  { %v1067_v24 = vadd.f32 %v1516_v16, %v1895_v15  ;;  %v1058_v17 = vpop.f32.mrb[65].mxu0 }
 0x375   :  { %v1059_v18 = vadd.f32 %v1058_v17, %v1895_v15  ;;  %v1517_v19 = vpop.f32.mrb[66].mxu0 }
 0x376   :  { %1188 = vst.msk [vmem:[%s2059_s2 + $0x10] sm:$0xff] %vm1185_vm1, %v1067_v24  ;;  %v1070_v20 = vadd.f32 %v1517_v19, %v1895_v15  ;;  %v1061_v21 = vpop.f32.mrb[67].mxu0 }
 0x377   :  { %1186 = vst.msk [vmem:[%s2059_s2] sm:$0xff] %vm1185_vm1, %v1059_v18  ;;  %v1062_v36 = vadd.f32 %v1061_v21, %v1895_v15 }
 0x378   :  { %1189 = vst.msk [vmem:[%s2059_s2 + $0x18] sm:$0xff] %vm1185_vm1, %v1070_v20 }
 0x379   :  { %1187 = vst.msk [vmem:[%s2059_s2 + $0x8] sm:$0xff] %vm1185_vm1, %v1062_v36 }
 0x37b   :  { %v1520_v32 = vpop.f32.mrb[32].mxu1 }
 0x37c   :  { %v1083_v22 = vadd.f32 %v1520_v32, %v1895_v15  ;;  %v1074_v23 = vpop.f32.mrb[33].mxu1 }
 0x37d   :  { %v1075_v25 = vadd.f32 %v1074_v23, %v1895_v15  ;;  %v1521_v37 = vpop.f32.mrb[34].mxu1 }
 0x37e   :  { %1192 = vst.msk [vmem:[%s2059_s2 + $0x30] sm:$0xff] %vm1185_vm1, %v1083_v22  ;;  %v1086_v26 = vadd.f32 %v1521_v37, %v1895_v15  ;;  %v1077_v27 = vpop.f32.mrb[35].mxu1 }
 0x37f   :  { %1190 = vst.msk [vmem:[%s2059_s2 + $0x20] sm:$0xff] %vm1185_vm1, %v1075_v25  ;;  %v1078_v30 = vadd.f32 %v1077_v27, %v1895_v15 }
 0x380   :  { %1193 = vst.msk [vmem:[%s2059_s2 + $0x38] sm:$0xff] %vm1185_vm1, %v1086_v26 }
 0x381   :  { %1191 = vst.msk [vmem:[%s2059_s2 + $0x28] sm:$0xff] %vm1185_vm1, %v1078_v30 }
 0x383   :  { %v1524_v31 = vpop.f32.mrb[36].mxu1 }
 0x384   :  { %v1099_v33 = vadd.f32 %v1524_v31, %v1895_v15  ;;  %v1090_v28 = vpop.f32.mrb[37].mxu1 }
 0x385   :  { %v1091_v34 = vadd.f32 %v1090_v28, %v1895_v15  ;;  %v1525_v35 = vpop.f32.mrb[38].mxu1 }
 0x386   :  { %1196 = vst.msk [vmem:[%s2059_s2 + $0x50] sm:$0xff] %vm1185_vm1, %v1099_v33  ;;  %v1102_v38 = vadd.f32 %v1525_v35, %v1895_v15  ;;  %v1093_v39 = vpop.f32.mrb[39].mxu1 }
 0x387   :  { %1194 = vst.msk [vmem:[%s2059_s2 + $0x40] sm:$0xff] %vm1185_vm1, %v1091_v34  ;;  %v1094_v40 = vadd.f32 %v1093_v39, %v1895_v15 }
 0x388   :  { %1197 = vst.msk [vmem:[%s2059_s2 + $0x58] sm:$0xff] %vm1185_vm1, %v1102_v38 }
 0x389   :  { %1195 = vst.msk [vmem:[%s2059_s2 + $0x48] sm:$0xff] %vm1185_vm1, %v1094_v40 }
 0x38b   :  { %v1528_v41 = vpop.f32.mrb[40].mxu1 }
 0x38c   :  { %v1115_v42 = vadd.f32 %v1528_v41, %v1895_v15  ;;  %v1106_v43 = vpop.f32.mrb[41].mxu1 }
 0x38d   :  { %v1107_v29 = vadd.f32 %v1106_v43, %v1895_v15  ;;  %v1529_v44 = vpop.f32.mrb[42].mxu1 }
 0x38e   :  { %1200 = vst.msk [vmem:[%s2059_s2 + $0x70] sm:$0xff] %vm1185_vm1, %v1115_v42  ;;  %v1118_v45 = vadd.f32 %v1529_v44, %v1895_v15  ;;  %v1109_v46 = vpop.f32.mrb[43].mxu1 }
 0x38f   :  { %1198 = vst.msk [vmem:[%s2059_s2 + $0x60] sm:$0xff] %vm1185_vm1, %v1107_v29  ;;  %v1110_v47 = vadd.f32 %v1109_v46, %v1895_v15 }
 0x390   :  { %1201 = vst.msk [vmem:[%s2059_s2 + $0x78] sm:$0xff] %vm1185_vm1, %v1118_v45 }
 0x391   :  { %1199 = vst.msk [vmem:[%s2059_s2 + $0x68] sm:$0xff] %vm1185_vm1, %v1110_v47 }
 0x393   :  { %v1532_v48 = vpop.f32.mrb[44].mxu1 }
 0x394   :  { %v1131_v49 = vadd.f32 %v1532_v48, %v1895_v15  ;;  %v1122_v50 = vpop.f32.mrb[45].mxu1 }
 0x395   :  { %v1123_v51 = vadd.f32 %v1122_v50, %v1895_v15  ;;  %v1533_v52 = vpop.f32.mrb[46].mxu1 }
 0x396   :  { %1204 = vst.msk [vmem:[%s2059_s2 + $0x90] sm:$0xff] %vm1185_vm1, %v1131_v49  ;;  %v1134_v53 = vadd.f32 %v1533_v52, %v1895_v15  ;;  %v1125_v54 = vpop.f32.mrb[47].mxu1 }
 0x397   :  { %1202 = vst.msk [vmem:[%s2059_s2 + $0x80] sm:$0xff] %vm1185_vm1, %v1123_v51  ;;  %v1126_v55 = vadd.f32 %v1125_v54, %v1895_v15 }
 0x398   :  { %1205 = vst.msk [vmem:[%s2059_s2 + $0x98] sm:$0xff] %vm1185_vm1, %v1134_v53 }
 0x399   :  { %1203 = vst.msk [vmem:[%s2059_s2 + $0x88] sm:$0xff] %vm1185_vm1, %v1126_v55 }
 0x39b   :  { %v1536_v56 = vpop.f32.mrb[48].mxu1 }
 0x39c   :  { %v1147_v57 = vadd.f32 %v1536_v56, %v1895_v15  ;;  %v1138_v58 = vpop.f32.mrb[49].mxu1 }
 0x39d   :  { %v1139_v59 = vadd.f32 %v1138_v58, %v1895_v15  ;;  %v1537_v60 = vpop.f32.mrb[50].mxu1 }
 0x39e   :  { %1208 = vst.msk [vmem:[%s2059_s2 + $0xb0] sm:$0xff] %vm1185_vm1, %v1147_v57  ;;  %v1150_v61 = vadd.f32 %v1537_v60, %v1895_v15  ;;  %v1141_v62 = vpop.f32.mrb[51].mxu1 }
 0x39f   :  { %1206 = vst.msk [vmem:[%s2059_s2 + $0xa0] sm:$0xff] %vm1185_vm1, %v1139_v59  ;;  %v1142_v63 = vadd.f32 %v1141_v62, %v1895_v15 }
 0x3a0   :  { %1209 = vst.msk [vmem:[%s2059_s2 + $0xb8] sm:$0xff] %vm1185_vm1, %v1150_v61 }
 0x3a1   :  { %1207 = vst.msk [vmem:[%s2059_s2 + $0xa8] sm:$0xff] %vm1185_vm1, %v1142_v63 }
 0x3a3   :  { %v1540_v0 = vpop.f32.mrb[52].mxu1 }
 0x3a4   :  { %v1163_v1 = vadd.f32 %v1540_v0, %v1895_v15  ;;  %v1154_v2 = vpop.f32.mrb[53].mxu1 }
 0x3a5   :  { %v1155_v3 = vadd.f32 %v1154_v2, %v1895_v15  ;;  %v1541_v4 = vpop.f32.mrb[54].mxu1 }
 0x3a6   :  { %1212 = vst.msk [vmem:[%s2059_s2 + $0xd0] sm:$0xff] %vm1185_vm1, %v1163_v1  ;;  %v1166_v5 = vadd.f32 %v1541_v4, %v1895_v15  ;;  %v1157_v6 = vpop.f32.mrb[55].mxu1 }
 0x3a7   :  { %1210 = vst.msk [vmem:[%s2059_s2 + $0xc0] sm:$0xff] %vm1185_vm1, %v1155_v3  ;;  %v1158_v7 = vadd.f32 %v1157_v6, %v1895_v15 }
 0x3a8   :  { %1213 = vst.msk [vmem:[%s2059_s2 + $0xd8] sm:$0xff] %vm1185_vm1, %v1166_v5 }
 0x3a9   :  { %1211 = vst.msk [vmem:[%s2059_s2 + $0xc8] sm:$0xff] %vm1185_vm1, %v1158_v7 }
 0x3ab   :  { %v1544_v8 = vpop.f32.mrb[56].mxu1 }
 0x3ac   :  { %v1179_v9 = vadd.f32 %v1544_v8, %v1895_v15  ;;  %v1170_v10 = vpop.f32.mrb[57].mxu1 }
 0x3ad   :  { %v1171_v11 = vadd.f32 %v1170_v10, %v1895_v15  ;;  %v1545_v12 = vpop.f32.mrb[58].mxu1 }
 0x3ae   :  { %1216 = vst.msk [vmem:[%s2059_s2 + $0xf0] sm:$0xff] %vm1185_vm1, %v1179_v9  ;;  %v1182_v13 = vadd.f32 %v1545_v12, %v1895_v15  ;;  %v1173_v14 = vpop.f32.mrb[59].mxu1 }
 0x3af   :  { %1214 = vst.msk [vmem:[%s2059_s2 + $0xe0] sm:$0xff] %vm1185_vm1, %v1171_v11  ;;  %v1174_v16 = vadd.f32 %v1173_v14, %v1895_v15 }
 0x3b0   :  { %1217 = vst.msk [vmem:[%s2059_s2 + $0xf8] sm:$0xff] %vm1185_vm1, %v1182_v13 }
 0x3b1   :  { %1215 = vst.msk [vmem:[%s2059_s2 + $0xe8] sm:$0xff] %vm1185_vm1, %v1174_v16 }

</bundles_post_ra>
